<compile_context>
chip_gen: v7x
topology: tpu7x:2x2x1
jax: 0.10.0
libtpu: 0.0.40
codegen_flags: <defaults>
</compile_context>

<pallas_src>
import functools

import jax
import jax.numpy as jnp
from jax.experimental import pallas as pl
from jax.experimental.pallas import tpu as pltpu

OPENAI_CLIP_MEAN = (0.48145466, 0.4578275, 0.40821073)
OPENAI_CLIP_STD = (0.26862954, 0.26130258, 0.27577711)


def _round_up(x, m):
    return (x + m - 1) // m * m


# ------------------------------- fused kernel --------------------------------

def _clipiqa_fused_kernel(patches_ref, w1_ref, b1_ref, w2_ref, b2_ref,
                          diff_ref, o_ref, pooled_acc, *,
                          n_patches, tm, n_pairs):
    """Grid = (B, T): axis 0 = image (parallel), axis 1 = patch-tile (reduction)."""
    f32 = jnp.float32
    t = pl.program_id(1)

    @pl.when(t == 0)
    def _():
        pooled_acc[...] = jnp.zeros_like(pooled_acc)

    # ---- patch-embed MLP on this tile (bf16 MXU operands, f32 accumulation).
    # (x - mean)/std is already folded into w1/b1 wrapper-side.
    x = patches_ref[0]                                            # (tm, K) bf16
    h = jnp.dot(x, w1_ref[...], preferred_element_type=f32)       # (tm, H) f32
    # TODO(synk): tanh-approx GELU; torch.nn.GELU defaults to exact erf.
    h = jax.nn.gelu(h + b1_ref[...], approximate=True)

    # zero-padded patch rows are NOT zero after bias+GELU -> mask them out
    row = t * tm + jax.lax.broadcasted_iota(jnp.int32, (tm, 1), 0)
    h = jnp.where(row < n_patches, h, 0.0)

    # running sum for the mean pool over patches (VMEM-resident accumulator)
    pooled_acc[...] += jnp.sum(h, axis=0, keepdims=True)          # (1, H)

    @pl.when(t == pl.num_programs(1) - 1)
    def _():
        pooled = pooled_acc[...] * (1.0 / n_patches)              # mean pool
        img = jnp.dot(pooled, w2_ref[...],
                      preferred_element_type=f32) + b2_ref[...]   # (1, D)
        img_n = img * jax.lax.rsqrt(
            jnp.sum(img * img, axis=-1, keepdims=True) + 1e-12)

        # logits_pos - logits_neg against the precomputed, scale-folded text
        # matrix; softmax over each (pos, neg) pair == sigmoid(l_pos - l_neg).
        l_diff = jnp.dot(img_n, diff_ref[...],
                         preferred_element_type=f32)              # (1, 128)
        p_pos = jax.nn.sigmoid(l_diff)
        col = jax.lax.broadcasted_iota(jnp.int32, p_pos.shape, 1)
        score = jnp.sum(jnp.where(col < n_pairs, p_pos, 0.0),
                        axis=-1, keepdims=True) * (1.0 / n_pairs)  # (1, 1)
        o_ref[...] = jnp.broadcast_to(score, o_ref.shape).astype(o_ref.dtype)


def clipiqa_fused(patches, w1, b1, w2, b2, diff_t, *, n_patches, tm, n_pairs):
    B, p_pad, K = patches.shape
    H = w1.shape[1]
    D = w2.shape[1]
    n_lanes = diff_t.shape[1]
    T = p_pad // tm

    kern = functools.partial(_clipiqa_fused_kernel, n_patches=n_patches,
                             tm=tm, n_pairs=n_pairs)
    out = pl.pallas_call(
        kern,
        out_shape=jax.ShapeDtypeStruct((B, 1, 128), jnp.float32),
        grid=(B, T),
        in_specs=[
            pl.BlockSpec((1, tm, K), lambda b, t: (b, t, 0)),   # patch tiles (pipelined)
            pl.BlockSpec((K, H), lambda b, t: (0, 0)),          # patch-embed W (resident)
            pl.BlockSpec((1, H), lambda b, t: (0, 0)),          # patch-embed bias
            pl.BlockSpec((H, D), lambda b, t: (0, 0)),          # image projection
            pl.BlockSpec((1, D), lambda b, t: (0, 0)),          # image projection bias
            pl.BlockSpec((D, n_lanes), lambda b, t: (0, 0)),    # text diff matrix (resident)
        ],
        out_specs=pl.BlockSpec((1, 1, 128), lambda b, t: (b, 0, 0)),
        scratch_shapes=[pltpu.VMEM((1, H), jnp.float32)],
        compiler_params=pltpu.CompilerParams(
            dimension_semantics=("parallel", "arbitrary")),
    )(patches, w1, b1.reshape(1, H), w2, b2.reshape(1, D), diff_t)
    return out[:, 0, :1]                                          # (B, 1)


# --------------------------- parameter setup (glue) ---------------------------

def fold_normalization_into_patch_embed(w_patch, b_patch, mean, std, *, patch):
    """Fold (x - mean)/std per channel into the patch-embed linear layer.

    Patch features are flattened in (C, ph, pw) order, so per-feature stats are
    the per-channel stats repeated patch*patch times. Exact for affine->linear.
    """
    pp = patch * patch
    mean_f = jnp.repeat(jnp.asarray(mean, jnp.float32), pp)          # (C*pp,)
    inv_std_f = jnp.repeat(1.0 / jnp.asarray(std, jnp.float32), pp)  # (C*pp,)
    w_eff = w_patch * inv_std_f[:, None]
    b_eff = b_patch - (mean_f * inv_std_f) @ w_patch
    return w_eff, b_eff


def init_params(key, *, channels=3, patch=8, hidden=128, embed_dim=128,
                vocab=64, seq=8, n_pairs=5):
    patch_dim = channels * patch * patch
    ks = jax.random.split(key, 6)
    w_patch = 0.02 * jax.random.normal(ks[0], (patch_dim, hidden), jnp.float32)
    b_patch = jnp.zeros((hidden,), jnp.float32)
    w_eff, b_eff = fold_normalization_into_patch_embed(
        w_patch, b_patch, OPENAI_CLIP_MEAN, OPENAI_CLIP_STD, patch=patch)

    p = {
        "w_patch_eff": w_eff,            # (patch_dim, hidden) — norm folded
        "b_patch_eff": b_eff,            # (hidden,)
        "w_img_proj": 0.02 * jax.random.normal(ks[1], (hidden, embed_dim), jnp.float32),
        "b_img_proj": jnp.zeros((embed_dim,), jnp.float32),
        "token_embedding": 0.02 * jax.random.normal(ks[2], (vocab, embed_dim), jnp.float32),
        "pos_embedding": 0.01 * jax.random.normal(ks[3], (seq, embed_dim), jnp.float32),
        "text_projection": 0.02 * jax.random.normal(ks[4], (embed_dim, embed_dim), jnp.float32),
        "logit_scale": jnp.float32(jnp.log(1.0 / 0.07)),
        "patch": patch,
        "n_pairs": n_pairs,
    }
    # 2*n_pairs tokenized prompts, stored PRE-GROUPED as
    # [pos_0..pos_{n-1}, neg_0..neg_{n-1}] (de-interleaved ordering of
    # 'Good image','bad image','Sharp image',...), so pair k is (row k, row
    # k+n_pairs).  EOT token (= vocab-1) is last, so argmax(-1) selects it —
    # mirrors clip.tokenize + CLIP's EOT pooling.
    toks = jax.random.randint(ks[5], (2 * n_pairs, seq), 1, vocab - 1)
    toks = toks.at[:, -1].set(vocab - 1)
    p["prompt_tokens"] = toks
    return p


# -------------------------------- forward pass --------------------------------

def clipiqa_forward(x, params):
    B, C, H, W = x.shape
    patch = params["patch"]
    n_pairs = params["n_pairs"]
    gh, gw = H // patch, W // patch
    P = gh * gw
    K = C * patch * patch
    D = params["text_projection"].shape[1]

    # ---- image patches (layout-only glue; (x-mean)/std folded into w1/b1) ----
    patches = x.reshape(B, C, gh, patch, gw, patch)
    patches = patches.transpose(0, 2, 4, 1, 3, 5).reshape(B, P, K)

    # row tile: 256 at realistic sizes (fills the 256-wide MXU, bounds VMEM on
    # v7x); for small P a single full-dim tile (padded rows are masked in-kernel)
    tm = min(256, _round_up(P, 8))
    p_pad = _round_up(P, tm)
    if p_pad > P:
        patches = jnp.pad(patches, ((0, 0), (0, p_pad - P), (0, 0)))
    patches = patches.astype(jnp.bfloat16)   # halves the dominant HBM->VMEM DMA

    # ---- text branch: image-independent -> precomputed once, NOT in the kernel
    # TODO(synk): CLIP's multi-layer text transformer + ln_final is not
    # implemented; kept: token embedding + positional embedding + EOT-token
    # selection + text_projection + feature normalization.
    toks = params["prompt_tokens"]
    emb = jnp.take(params["token_embedding"], toks, axis=0)
    emb = emb + params["pos_embedding"][None, :, :]
    eot = jnp.argmax(toks, axis=-1)
    x_eot = emb[jnp.arange(toks.shape[0]), eot]                    # (2*n_pairs, D)
    txt = x_eot @ params["text_projection"]
    txt_n = txt * jax.lax.rsqrt(
        jnp.sum(txt * txt, axis=-1, keepdims=True) + 1e-12)
    scale = jnp.exp(params["logit_scale"])
    # softmax over each (pos, neg) pair == sigmoid(l_pos - l_neg); fold
    # exp(logit_scale) and the pos-neg difference into one lane-dense (D, 128)
    # matrix so the kernel head is a single matmul + sigmoid + masked mean.
    diff = scale * (txt_n[:n_pairs] - txt_n[n_pairs:])             # (n_pairs, D)
    diff_t = jnp.zeros((D, 128), jnp.float32).at[:, :n_pairs].set(diff.T)

    # TODO(synk): full CLIP RN50 visual backbone (conv stem, residual stages,
    # attention pooling) replaced by a synthetic patch-embed MLP + mean pool +
    # projection, fused into the single Pallas kernel below.
    return clipiqa_fused(
        patches,
        params["w_patch_eff"].astype(jnp.bfloat16),
        params["b_patch_eff"],
        params["w_img_proj"], params["b_img_proj"],
        diff_t, n_patches=P, tm=tm, n_pairs=n_pairs)


# ------------------------------------ main -------------------------------------

if __name__ == "__main__":
    key = jax.random.PRNGKey(0)
    k_x, k_p = jax.random.split(key)

    B, C, H, W = 2, 3, 16, 16      # NCHW, 3 channels required by CLIP mean/std
    x = jax.random.uniform(k_x, (B, C, H, W), jnp.float32)

    params = init_params(k_p, channels=C, patch=8, hidden=128, embed_dim=128,
                         vocab=64, seq=8, n_pairs=5)

    out = jax.block_until_ready(clipiqa_forward(x, params))
    assert out.shape == (B, 1) and out.dtype == jnp.float32
    assert bool(jnp.all(jnp.isfinite(out)))
    print("KERNEL_OK")
</pallas_src>

<mosaic_0001>
module attributes {stable_mosaic.version = 11 : i64} {
  func.func @_clipiqa_fused_kernel(%arg0: i32, %arg1: i32, %arg2: memref<1x8x192xbf16, #tpu.memory_space<vmem>>, %arg3: memref<192x128xbf16, #tpu.memory_space<vmem>>, %arg4: memref<1x128xf32, #tpu.memory_space<vmem>>, %arg5: memref<128x128xf32, #tpu.memory_space<vmem>>, %arg6: memref<1x128xf32, #tpu.memory_space<vmem>>, %arg7: memref<128x128xf32, #tpu.memory_space<vmem>>, %arg8: memref<1x1x128xf32, #tpu.memory_space<vmem>>, %arg9: memref<1x128xf32, #tpu.memory_space<vmem>>) attributes {dimension_semantics = [#tpu.dimension_semantics<parallel>, #tpu.dimension_semantics<arbitrary>], iteration_bounds = array<i64: 2, 1>, scalar_prefetch = 0 : i64, scratch_operands = 1 : i64, tpu.core_type = #tpu.core_type<tc>, window_params = [{transform_indices = @transform_0, window_bounds = array<i64: 1, 8, 192>}, {pipeline_mode = #tpu.pipeline_mode<synchronous>, transform_indices = @transform_1, window_bounds = array<i64: 192, 128>}, {pipeline_mode = #tpu.pipeline_mode<synchronous>, transform_indices = @transform_2, window_bounds = array<i64: 1, 128>}, {pipeline_mode = #tpu.pipeline_mode<synchronous>, transform_indices = @transform_3, window_bounds = array<i64: 128, 128>}, {pipeline_mode = #tpu.pipeline_mode<synchronous>, transform_indices = @transform_4, window_bounds = array<i64: 1, 128>}, {pipeline_mode = #tpu.pipeline_mode<synchronous>, transform_indices = @transform_5, window_bounds = array<i64: 128, 128>}, {transform_indices = @transform_6, window_bounds = array<i64: 1, 1, 128>}]} {
    %c0_i32 = arith.constant 0 : i32
    %0 = arith.cmpi eq, %arg1, %c0_i32 : i32
    %1 = arith.extui %0 : i1 to i32
    %c0_i32_0 = arith.constant 0 : i32
    %2 = arith.cmpi ne, %1, %c0_i32_0 : i32
    scf.if %2 {
      %cst_19 = arith.constant 0.000000e+00 : f32
      %41 = vector.broadcast %cst_19 : f32 to vector<1x128xf32>
      %c0_20 = arith.constant 0 : index
      %c0_21 = arith.constant 0 : index
      %42 = vector.load %arg9[%c0_20, %c0_21] : memref<1x128xf32, #tpu.memory_space<vmem>>, vector<1x128xf32>
      tpu.vector_store %arg9[%c0_20, %c0_21], %41 {strides = array<i32>} : memref<1x128xf32, #tpu.memory_space<vmem>>, vector<1x128xf32>,
    } else {
    }
    %c0 = arith.constant 0 : index
    %c0_1 = arith.constant 0 : index
    %c0_2 = arith.constant 0 : index
    %3 = vector.load %arg2[%c0, %c0_1, %c0_2] : memref<1x8x192xbf16, #tpu.memory_space<vmem>>, vector<1x8x192xbf16>
    %4 = vector.shape_cast %3 : vector<1x8x192xbf16> to vector<8x192xbf16>
    %c0_3 = arith.constant 0 : index
    %c0_4 = arith.constant 0 : index
    %5 = vector.load %arg3[%c0_3, %c0_4] : memref<192x128xbf16, #tpu.memory_space<vmem>>, vector<192x128xbf16>
    %cst = arith.constant dense<0.000000e+00> : vector<8x128xf32>
    %6 = tpu.matmul %4, %5, %cst {dimension_numbers = #tpu.dot_dimension_numbers<[1], [0], [0], [1], [0, 0, 1, 1], [], []>} : vector<8x192xbf16>, vector<192x128xbf16>, vector<8x128xf32> -> vector<8x128xf32>
    %c0_5 = arith.constant 0 : index
    %c0_6 = arith.constant 0 : index
    %7 = vector.load %arg4[%c0_5, %c0_6] : memref<1x128xf32, #tpu.memory_space<vmem>>, vector<1x128xf32>
    %8 = vector.broadcast %7 : vector<1x128xf32> to vector<8x128xf32>
    %9 = arith.addf %6, %8 : vector<8x128xf32>
    %10 = arith.mulf %9, %9 : vector<8x128xf32>
    %11 = arith.mulf %9, %10 : vector<8x128xf32>
    %cst_7 = arith.constant 4.471500e-02 : f32
    %12 = vector.broadcast %cst_7 : f32 to vector<8x128xf32>
    %13 = arith.mulf %12, %11 : vector<8x128xf32>
    %14 = arith.addf %9, %13 : vector<8x128xf32>
    %cst_8 = arith.constant 0.797884583 : f32
    %15 = vector.broadcast %cst_8 : f32 to vector<8x128xf32>
    %16 = arith.mulf %15, %14 : vector<8x128xf32>
    %17 = math.tanh %16 : vector<8x128xf32>
    %cst_9 = arith.constant 1.000000e+00 : f32
    %18 = vector.broadcast %cst_9 : f32 to vector<8x128xf32>
    %19 = arith.addf %18, %17 : vector<8x128xf32>
    %cst_10 = arith.constant 5.000000e-01 : f32
    %20 = vector.broadcast %cst_10 : f32 to vector<8x128xf32>
    %21 = arith.mulf %20, %19 : vector<8x128xf32>
    %22 = arith.mulf %9, %21 : vector<8x128xf32>
    %c8_i32 = arith.constant 8 : i32
    %23 = arith.muli %arg1, %c8_i32 : i32
    %24 = tpu.iota {dimensions = array<i32: 0>} : vector<8x1xi32>
    %25 = vector.broadcast %23 : i32 to vector<8x1xi32>
    %26 = arith.addi %25, %24 : vector<8x1xi32>
    %c4_i32 = arith.constant 4 : i32
    %27 = vector.broadcast %c4_i32 : i32 to vector<8x1xi32>
    %28 = arith.cmpi slt, %26, %27 : vector<8x1xi32>
    %cst_11 = arith.constant 0.000000e+00 : f32
    %29 = vector.shape_cast %28 : vector<8x1xi1> to vector<8x1xi1>
    %30 = vector.broadcast %29 : vector<8x1xi1> to vector<8x128xi1>
    %31 = vector.broadcast %cst_11 : f32 to vector<8x128xf32>
    %32 = arith.select %30, %22, %31 : vector<8x128xi1>, vector<8x128xf32>
    %c0_12 = arith.constant 0 : index
    %c0_13 = arith.constant 0 : index
    %33 = vector.load %arg9[%c0_12, %c0_13] : memref<1x128xf32, #tpu.memory_space<vmem>>, vector<1x128xf32>
    %cst_14 = arith.constant dense<0.000000e+00> : vector<128xf32>
    %34 = vector.multi_reduction <add>, %32, %cst_14 [0] : vector<8x128xf32> to vector<128xf32>
    %35 = vector.shape_cast %34 : vector<128xf32> to vector<1x128xf32>
    %36 = arith.addf %33, %35 : vector<1x128xf32>
    %c0_15 = arith.constant 0 : index
    %c0_16 = arith.constant 0 : index
    %37 = vector.load %arg9[%c0_15, %c0_16] : memref<1x128xf32, #tpu.memory_space<vmem>>, vector<1x128xf32>
    tpu.vector_store %arg9[%c0_15, %c0_16], %36 {strides = array<i32>} : memref<1x128xf32, #tpu.memory_space<vmem>>, vector<1x128xf32>,
    %c0_i32_17 = arith.constant 0 : i32
    %38 = arith.cmpi eq, %arg1, %c0_i32_17 : i32
    %39 = arith.extui %38 : i1 to i32
    %c0_i32_18 = arith.constant 0 : i32
    %40 = arith.cmpi ne, %39, %c0_i32_18 : i32
    scf.if %40 {
      %c0_19 = arith.constant 0 : index
      %c0_20 = arith.constant 0 : index
      %41 = vector.load %arg9[%c0_19, %c0_20] : memref<1x128xf32, #tpu.memory_space<vmem>>, vector<1x128xf32>
      %cst_21 = arith.constant 2.500000e-01 : f32
      %42 = vector.broadcast %cst_21 : f32 to vector<1x128xf32>
      %43 = arith.mulf %41, %42 : vector<1x128xf32>
      %c0_22 = arith.constant 0 : index
      %c0_23 = arith.constant 0 : index
      %44 = vector.load %arg5[%c0_22, %c0_23] : memref<128x128xf32, #tpu.memory_space<vmem>>, vector<128x128xf32>
      %cst_24 = arith.constant dense<0.000000e+00> : vector<1x128xf32>
      %45 = tpu.matmul %43, %44, %cst_24 {dimension_numbers = #tpu.dot_dimension_numbers<[1], [0], [0], [1], [0, 0, 1, 1], [], []>} : vector<1x128xf32>, vector<128x128xf32>, vector<1x128xf32> -> vector<1x128xf32>
      %c0_25 = arith.constant 0 : index
      %c0_26 = arith.constant 0 : index
      %46 = vector.load %arg6[%c0_25, %c0_26] : memref<1x128xf32, #tpu.memory_space<vmem>>, vector<1x128xf32>
      %47 = arith.addf %45, %46 : vector<1x128xf32>
      %48 = arith.mulf %47, %47 : vector<1x128xf32>
      %cst_27 = arith.constant dense<0.000000e+00> : vector<1xf32>
      %49 = vector.multi_reduction <add>, %48, %cst_27 [1] : vector<1x128xf32> to vector<1xf32>
      %50 = vector.shape_cast %49 : vector<1xf32> to vector<1x1xf32>
      %cst_28 = arith.constant 9.99999996E-13 : f32
      %51 = vector.broadcast %cst_28 : f32 to vector<1x1xf32>
      %52 = arith.addf %50, %51 : vector<1x1xf32>
      %53 = math.rsqrt %52 : vector<1x1xf32>
      %54 = vector.broadcast %53 : vector<1x1xf32> to vector<1x128xf32>
      %55 = arith.mulf %47, %54 : vector<1x128xf32>
      %c0_29 = arith.constant 0 : index
      %c0_30 = arith.constant 0 : index
      %56 = vector.load %arg7[%c0_29, %c0_30] : memref<128x128xf32, #tpu.memory_space<vmem>>, vector<128x128xf32>
      %cst_31 = arith.constant dense<0.000000e+00> : vector<1x128xf32>
      %57 = tpu.matmul %55, %56, %cst_31 {dimension_numbers = #tpu.dot_dimension_numbers<[1], [0], [0], [1], [0, 0, 1, 1], [], []>} : vector<1x128xf32>, vector<128x128xf32>, vector<1x128xf32> -> vector<1x128xf32>
      %58 = arith.negf %57 : vector<1x128xf32>
      %59 = math.exp %58 : vector<1x128xf32>
      %cst_32 = arith.constant 1.000000e+00 : f32
      %60 = vector.broadcast %cst_32 : f32 to vector<1x128xf32>
      %61 = arith.addf %60, %59 : vector<1x128xf32>
      %62 = arith.divf %60, %61 : vector<1x128xf32>
      %63 = tpu.iota {dimensions = array<i32: 1>} : vector<1x128xi32>
      %c5_i32 = arith.constant 5 : i32
      %64 = vector.broadcast %c5_i32 : i32 to vector<1x128xi32>
      %65 = arith.cmpi slt, %63, %64 : vector<1x128xi32>
      %cst_33 = arith.constant 0.000000e+00 : f32
      %66 = vector.broadcast %cst_33 : f32 to vector<1x128xf32>
      %67 = arith.select %65, %62, %66 : vector<1x128xi1>, vector<1x128xf32>
      %cst_34 = arith.constant dense<0.000000e+00> : vector<1xf32>
      %68 = vector.multi_reduction <add>, %67, %cst_34 [1] : vector<1x128xf32> to vector<1xf32>
      %69 = vector.shape_cast %68 : vector<1xf32> to vector<1x1xf32>
      %cst_35 = arith.constant 2.000000e-01 : f32
      %70 = vector.broadcast %cst_35 : f32 to vector<1x1xf32>
      %71 = arith.mulf %69, %70 : vector<1x1xf32>
      %72 = vector.shape_cast %71 : vector<1x1xf32> to vector<1x1x1xf32>
      %73 = vector.broadcast %72 : vector<1x1x1xf32> to vector<1x1x128xf32>
      %c0_36 = arith.constant 0 : index
      %c0_37 = arith.constant 0 : index
      %c0_38 = arith.constant 0 : index
      %74 = vector.load %arg8[%c0_36, %c0_37, %c0_38] : memref<1x1x128xf32, #tpu.memory_space<vmem>>, vector<1x1x128xf32>
      tpu.vector_store %arg8[%c0_36, %c0_37, %c0_38], %73 {strides = array<i32>} : memref<1x1x128xf32, #tpu.memory_space<vmem>>, vector<1x1x128xf32>,
    } else {
    }
    return
  }
  func.func @transform_0(%arg0: i32, %arg1: i32) -> (i32, i32, i32) {
    %c0_i32 = arith.constant 0 : i32
    %c0_i32_0 = arith.constant 0 : i32
    return %arg0, %arg1, %c0_i32 : i32, i32, i32
  }
  func.func @transform_1(%arg0: i32, %arg1: i32) -> (i32, i32) {
    %c0_i32 = arith.constant 0 : i32
    %c0_i32_0 = arith.constant 0 : i32
    %c0_i32_1 = arith.constant 0 : i32
    return %c0_i32, %c0_i32_0 : i32, i32
  }
  func.func @transform_2(%arg0: i32, %arg1: i32) -> (i32, i32) {
    %c0_i32 = arith.constant 0 : i32
    %c0_i32_0 = arith.constant 0 : i32
    %c0_i32_1 = arith.constant 0 : i32
    return %c0_i32, %c0_i32_0 : i32, i32
  }
  func.func @transform_3(%arg0: i32, %arg1: i32) -> (i32, i32) {
    %c0_i32 = arith.constant 0 : i32
    %c0_i32_0 = arith.constant 0 : i32
    %c0_i32_1 = arith.constant 0 : i32
    return %c0_i32, %c0_i32_0 : i32, i32
  }
  func.func @transform_4(%arg0: i32, %arg1: i32) -> (i32, i32) {
    %c0_i32 = arith.constant 0 : i32
    %c0_i32_0 = arith.constant 0 : i32
    %c0_i32_1 = arith.constant 0 : i32
    return %c0_i32, %c0_i32_0 : i32, i32
  }
  func.func @transform_5(%arg0: i32, %arg1: i32) -> (i32, i32) {
    %c0_i32 = arith.constant 0 : i32
    %c0_i32_0 = arith.constant 0 : i32
    %c0_i32_1 = arith.constant 0 : i32
    return %c0_i32, %c0_i32_0 : i32, i32
  }
  func.func @transform_6(%arg0: i32, %arg1: i32) -> (i32, i32, i32) {
    %c0_i32 = arith.constant 0 : i32
    %c0_i32_0 = arith.constant 0 : i32
    %c0_i32_1 = arith.constant 0 : i32
    return %arg0, %c0_i32, %c0_i32_0 : i32, i32, i32
  }
}

</mosaic_0001>

<bundles_post_ra>
// kernel: tpu_custom_call.1
= control target key start
LH: loop header
LB: loop body
LE: loop exit
PB: predicated region body
PF: predicated region fallthrough
CT: control target
= control target key end

     0   :  { %s1704_s0 = inlined_call_operand.hbm [shape: bf16[2,8,192], index: 0, kind: input, shape index: {}]   ;;  %s1705_s1 = inlined_call_operand.hbm [shape: bf16[192,128], index: 1, kind: input, shape index: {}]   ;;  %s1706_s2 = inlined_call_operand.vmem [shape: f32[1,128], index: 2, kind: input, shape index: {}]   ;;  %s1707_s3 = inlined_call_operand.hbm [shape: f32[128,128], index: 3, kind: input, shape index: {}]   ;;  %s1708_s4 = inlined_call_operand.vmem [shape: f32[1,128], index: 4, kind: input, shape index: {}]   ;;  %s1709_s5 = inlined_call_operand.hbm [shape: f32[128,128], index: 5, kind: input, shape index: {}]   ;;  %s1710_s6 = inlined_call_operand.hbm [shape: f32[2,1,128], index: 6, kind: output, shape index: {}]  }
   0x1   :  { %1717 = sst [smem:[#allocation18_spill]] %s1705_s1 }
   0x2   :  { %11 = vsyncpa [#allocation4], 0 }
   0x3   :  { %13 = vsyncpa [#allocation4 + $0x1], 0 }
   0x4   :  { %14 = vsyncpa [#allocation7], 0 }
   0x5   :  { %15 = vsyncpa [#allocation10], 0 }
   0x6   :  { %16 = vsyncpa [#allocation5], 0 }
   0x7   :  { %18 = vsyncpa [#allocation5 + $0x1], 0  ;;  %s1399_s21 = smov 0   ;;  %s1401_s22 = smov 0  }
   0x8   :  { %s1403_s23 = smov 0   ;;  %s1405_s24 = smov 0  }
   0x9   :  { %s1407_s25 = smov 0   ;;  %s1409_s26 = smov 0  }
   0xa LB: > { %1718 = sst [smem:[#allocation16_spill]] %s1329_s21  ;;  %s834_s27 = sadd.s32 4294967295, %s1349_s26   ;;  %s1349_s26 = sphi %s1409_s26, %s24_s26   ;;  %s1345_s25 = sphi %s1407_s25, %s1743_s25   ;;  %s1341_s24 = sphi %s1405_s24, %s1742_s24   ;;  %s1337_s23 = sphi %s1403_s23, %s1741_s23   ;;  %s1333_s22 = sphi %s1401_s22, %s1740_s22   ;;  %s1329_s21 = sphi %s1399_s21, %s1739_s21  }
   0xb   : > { %s835_s28 = sadd.s32 4294967294, %s1349_s26   ;;  %p58_p0 = scmp.ne.s32.totalorder %s1333_s22, %s1329_s21 }
   0xc   : > { %p1433_p1 = scmp.eq.s32.totalorder %s834_s27, 0  ;;  %p1437_p2 = scmp.eq.s32.totalorder %s834_s27, 1 }
   0xd   : > { %p193_p3 = scmp.eq.s32.totalorder %s835_s28, 1  ;;  %p836_p5 = scmp.ge.s32.totalorder %s1349_s26, 1 }
   0xe   : > { %s1719_s29 = scalar_select %p1433_p1, 1, 0 }
   0xf   : > { %s1720_s30 = scalar_select %p1437_p2, 1, 0 }
  0x10   : > { %p1443_p4 = por %p1433_p1, %p58_p0  ;;  %p1448_p6 = por %p193_p3, %p58_p0 }
  0x11   : > { %p200_p7 = scmp.lt.s32.totalorder %s1349_s26, 3  ;;  %s1351_s10 = smov [#allocation6]  }
  0x12   : > { %s1721_s7 = scalar_select %p1443_p4, 1, 0 }
  0x13   : > { %s1722_s8 = scalar_select %p1448_p6, 1, 0 }
  0x14   : > { %p1453_p8 = pnand %p836_p5, %p200_p7  ;;  %s212_s11 = sshll.u32 %s1351_s10, 4  ;;  %s1457_s11 = int_to_ptr.vmem [resolvable:$true] %s212_s11 }
  0x15   : > { %1723 = sst [smem:[#allocation17_spill]] %s1722_s8  ;;  %s1352_s13 = smov [#allocation8]  }
  0x16   : > { %s1724_s9 = scalar_select %p1453_p8, 1, 0 }
  0x17   : > { %p1038_p9 = pneg %p1453_p8  ;;  %s228_s14 = sshll.u32 %s1352_s13, 4  ;;  %s1468_s14 = int_to_ptr.vmem [resolvable:$true] %s228_s14 }
  0x18   : > { %s1726_s1 = sld [smem:[#allocation18_spill]] }
  0x19   : > { %p1464_p11 = pnand %p1038_p9, %p1433_p1 }
  0x1b   : > { %p1478_p13 = pneg %p1464_p11 }
  0x1e   : > { %s1145_s17 = scalar_lea.hbm %s1726_s1, 1536 }
  0x1f   : > { %p1146_p12 = scmp.ne.s32.totalorder %s1726_s1, %s1145_s17  ;;  %p1152_p5 = scmp.lt.u32.totalorder %s1145_s17, %s1726_s1 }
  0x21   : > { %p1148_p0 = pnand %p1478_p13, %p1146_p12 }
  0x23   : > { %p1149_p3 = pneg %p1148_p0 }
  0x25   : > { %p1154_p7 = pnand %p1152_p5, %p1149_p3 }
  0x27   : > { %1157 = shalt.err (!%p1154_p7)
}
  0x28   : > { %s1158_s10 = scalar_lea.vmem %s1457_s11, 1536  ;;  %p1166_p1 = scmp.lt.s32.totalorder %s1457_s11, %s1457_s11 }
  0x29   : > { %p1159_p9 = scmp.ne.s32.totalorder %s1457_s11, %s1158_s10  ;;  %p1167_p4 = scmp.lt.s32.totalorder %s1158_s10, %s1158_s10 }
  0x2b   : > { %p1161_p10 = pnand %p1159_p9, %p1478_p13  ;;  %p1168_p12 = por %p1167_p4, %p1166_p1 }
  0x2d   : > { %p1162_p6 = pneg %p1161_p10 }
  0x2f   : > { %p1169_p0 = pnand %p1168_p12, %p1162_p6 }
  0x31   : > { %1172 = shalt.err (!%p1169_p0)
}
  0x32   : > { %s1353_s13 = smov 64   ;;  %s1354_s15 = smov 4  }
  0x33   : > { %1041 = dma.hbm_to_vmem [thread:$0]  (!%p1464_p11), %s1726_s1, 1536, %s1457_s11, [#allocation7], %s1353_s13, %s1353_s13, %s1354_s15  }
  0x34   : > { %s1173_s27 = scalar_lea.hbm %s1707_s3, 2048 }
  0x35   : > { %p1174_p1 = scmp.ne.s32.totalorder %s1707_s3, %s1173_s27  ;;  %p1180_p10 = scmp.lt.u32.totalorder %s1173_s27, %s1707_s3 }
  0x37   : > { %p1176_p4 = pnand %p1174_p1, %p1478_p13 }
  0x39   : > { %p1177_p6 = pneg %p1176_p4 }
  0x3b   : > { %p1182_p3 = pnand %p1180_p10, %p1177_p6 }
  0x3d   : > { %1185 = shalt.err (!%p1182_p3)
}
  0x3e   : > { %s1186_s11 = scalar_lea.vmem %s1468_s14, 2048  ;;  %p1194_p12 = scmp.lt.s32.totalorder %s1468_s14, %s1468_s14 }
  0x3f   : > { %p1187_p5 = scmp.ne.s32.totalorder %s1468_s14, %s1186_s11  ;;  %p1195_p0 = scmp.lt.s32.totalorder %s1186_s11, %s1186_s11 }
  0x41   : > { %p1189_p7 = pnand %p1187_p5, %p1478_p13  ;;  %p1196_p1 = por %p1195_p0, %p1194_p12 }
  0x43   : > { %p1190_p9 = pneg %p1189_p7 }
  0x45   : > { %p1197_p4 = pnand %p1196_p1, %p1190_p9 }
  0x47   : > { %1200 = shalt.err (!%p1197_p4)
}
  0x48   : > { %s1355_s8 = smov 128   ;;  %s1356_s21 = smov 8  }
  0x49   : > { %1044 = dma.hbm_to_vmem [thread:$0]  (!%p1464_p11), %s1707_s3, 2048, %s1468_s14, [#allocation7], %s1355_s8, %s1355_s8, %s1356_s21  }
  0x4a   : > { %s1357_s16 = smov [#allocation9]   ;;  %s1201_s27 = scalar_lea.hbm %s1709_s5, 2048 }
  0x4b   : > { %s244_s17 = sshll.u32 %s1357_s16, 4  ;;  %p1202_p6 = scmp.ne.s32.totalorder %s1709_s5, %s1201_s27  ;;  %s245_s17 = int_to_ptr.vmem [resolvable:$true] %s244_s17 }
  0x4c   : > { %p1208_p5 = scmp.lt.u32.totalorder %s1201_s27, %s1709_s5 }
  0x4d   : > { %p1204_p10 = pnand %p1202_p6, %p1478_p13 }
  0x4f   : > { %p1205_p3 = pneg %p1204_p10 }
  0x51   : > { %p1210_p7 = pnand %p1208_p5, %p1205_p3 }
  0x53   : > { %1213 = shalt.err (!%p1210_p7)
}
  0x54   : > { %s1214_s14 = scalar_lea.vmem %s245_s17, 2048  ;;  %p1222_p1 = scmp.lt.s32.totalorder %s245_s17, %s245_s17 }
  0x55   : > { %p1215_p9 = scmp.ne.s32.totalorder %s245_s17, %s1214_s14  ;;  %p1223_p4 = scmp.lt.s32.totalorder %s1214_s14, %s1214_s14 }
  0x57   : > { %p1217_p12 = pnand %p1215_p9, %p1478_p13  ;;  %p1224_p8 = por %p1223_p4, %p1222_p1 }
  0x59   : > { %p1218_p0 = pneg %p1217_p12 }
  0x5b   : > { %p1225_p2 = pnand %p1224_p8, %p1218_p0 }
  0x5d   : > { %1228 = shalt.err (!%p1225_p2)
}
  0x5e   : > { %1047 = dma.hbm_to_vmem [thread:$0]  (!%p1464_p11), %s1709_s5, 2048, %s245_s17, [#allocation10], %s1355_s8, %s1355_s8, %s1356_s21  }
  0x5f   : > { %s36_s1 = sadd.s32 1, %s1345_s25  ;;  %s45_s20 = sadd.s32 1, %s1337_s23 }
  0x60   : > { %p38_p8 = scmp.ge.s32.totalorder %s36_s1, 2  ;;  %p52_p2 = scmp.ne.s32.totalorder %s1337_s23, %s1333_s22 }
  0x61   : > { %p53_p13 = scmp.eq.s32.totalorder %s1349_s26, 0  ;;  %p1729_p10 = scmp.ne.s32.totalorder %s1720_s30, 0 }
  0x62   : > { %s1745_s1 = smov (%p38_p8, %s36_s1), 0  ;;  %p1059_p11 = scmp.lt.s32.totalorder %s1349_s26, 2 }
  0x63   : > { %p1547_p6 = por %p53_p13, %p52_p2  ;;  %p1553_p3 = por %p1729_p10, %p52_p2 }
  0x64   : > { %s40_s18 = ssub.s32 %s1345_s25, %s1745_s1  ;;  %s258_s8 = sand.u32 1, %s1337_s23  }
  0x65   : > { %p43_p5 = scmp.eq.s32.totalorder %s40_s18, 0  ;;  %s841_s21 = sshll.u32 %s258_s8, 3 }
  0x66   : > { %s869_s19 = sshll.u32 %s1345_s25, 7  ;;  %s262_s30 = scalar_lea.vmem [#allocation3], %s841_s21 }
  0x67   : > { %s1562_s17 = scalar_select %p43_p5, %s1337_s23, %s45_s20  }
  0x68   : > { %s1568_s10 = scalar_lea.hbm %s1704_s0, %s869_s19  ;;  %s272_s11 = sshll.u32 %s262_s30, 4  ;;  %s1570_s11 = int_to_ptr.vmem [resolvable:$true] %s272_s11 }
  0x69   : > { %p1574_p7 = pnand %p1059_p11, %p1547_p6  ;;  %s259_s13 = scalar_lea.sflag [#allocation4], %s258_s8 }
  0x6a   : > { %s1229_s15 = scalar_lea.hbm %s1568_s10, 128  ;;  %s1234_s21 = scalar_lea.hbm %s1704_s0, 256 }
  0x6b   : > { %p1230_p9 = scmp.ne.s32.totalorder %s1568_s10, %s1229_s15  ;;  %p1231_p12 = pneg %p1574_p7 }
  0x6c   : > { %p1235_p4 = scmp.lt.u32.totalorder %s1568_s10, %s1704_s0  ;;  %p1236_p8 = scmp.lt.u32.totalorder %s1234_s21, %s1229_s15 }
  0x6d   : > { %p1232_p0 = pnand %p1231_p12, %p1230_p9  ;;  %p1238_p13 = scmp.lt.u32.totalorder %s1229_s15, %s1568_s10 }
  0x6e   : > { %p1237_p2 = por %p1236_p8, %p1235_p4 }
  0x6f   : > { %p1233_p1 = pneg %p1232_p0 }
  0x70   : > { %p1239_p6 = por %p1238_p13, %p1237_p2 }
  0x72   : > { %p1240_p10 = pnand %p1239_p6, %p1233_p1 }
  0x74   : > { %1243 = shalt.err (!%p1240_p10)
}
  0x75   : > { %s1244_s8 = scalar_lea.vmem %s1570_s11, 128  ;;  %s1358_s27 = smov [#allocation3]  }
  0x76   : > { %p1245_p11 = scmp.ne.s32.totalorder %s1570_s11, %s1244_s8  ;;  %s1249_s28 = sshll.u32 %s1358_s27, 4  ;;  %s1250_s28 = int_to_ptr.vmem [resolvable:$false] %s1249_s28 }
  0x77   : > { %s1251_s30 = scalar_lea.vmem %s1250_s28, 256  ;;  %p1252_p0 = scmp.lt.s32.totalorder %s1570_s11, %s1250_s28 }
  0x78   : > { %p1247_p5 = pnand %p1245_p11, %p1231_p12  ;;  %p1253_p4 = scmp.lt.s32.totalorder %s1251_s30, %s1244_s8 }
  0x7a   : > { %p1248_p9 = pneg %p1247_p5  ;;  %p1254_p8 = por %p1253_p4, %p1252_p0 }
  0x7c   : > { %p1255_p2 = pnand %p1254_p8, %p1248_p9 }
  0x7e   : > { %1258 = shalt.err (!%p1255_p2)
}
  0x7f   : > { %1051 = dma.hbm_to_vmem [thread:$0]  (!%p1574_p7), %s1568_s10, 128, %s1570_s11, %s259_s13  }
  0x80   : > { %p1732_p1 = scmp.ne.s32.totalorder %s1724_s9, 0 }
  0x81   : > { %s1606_s15 = sand.u32 (!%p1732_p1), 1, %s1333_s22   ;;  %p1733_p12 = scmp.ne.s32.totalorder (!%p1732_p1), %s1721_s7, 0 }
  0x82   : > { %281 = sbr.rel (%p1732_p1) target bundleno = 1230 (0x4ce), region = 44  ;;  %s845_s20 = sshll.u32 (!%p1732_p1), %s1606_s15, 3 }
  0x83   : > { %s284_s18 = scalar_lea.sflag (!%p1732_p1), [#allocation4], %s1606_s15  ;;  %s287_s21 = scalar_lea.vmem (!%p1732_p1), [#allocation3], %s845_s20 }
  0x89   : > { %1312 = dma.done.wait (%p1733_p12), %s284_s18, 128  }
  0x8a   : > { %1314 = vsyncadd (%p1733_p12), %s284_s18, 4294967168  ;;  %p1734_p13 = scmp.ne.s32.totalorder %s1719_s29, 0 }
  0x8c   : > { %1316 = dma.done.wait (%p1734_p13), [#allocation7], 3584  }
  0x8d   : > { %1318 = vsyncadd (%p1734_p13), [#allocation7], 4294963712 }
  0x8e   : > { %1320 = dma.done.wait (%p1734_p13), [#allocation10], 2048  }
  0x8f   : > { %1322 = vsyncadd (%p1734_p13), [#allocation10], 4294965248  ;;  %v1359_v0 = vmov 0   ;;  %v1123_v1 = vld [vmem:[#allocation6] sm:$0xff]   ;;  %v1124_v2 = vld [vmem:[#allocation6 + $0x8] sm:$0xff]   ;;  %vm443_vm0 = vcmask 523264   ;;  %v497_v53 = vlaneseq }
  0x90   : > { %447 = vmatprep.subr.bf16.mxu0 %v1359_v0  ;;  %v1125_v3 = vld [vmem:[#allocation6 + $0x10] sm:$0xff]   ;;  %v1126_v4 = vld [vmem:[#allocation6 + $0x18] sm:$0xff]   ;;  %v1127_v7 = vld [vmem:[#allocation6 + $0x20] sm:$0xff]   ;;  %v1360_v19 = vmov 0.0|0.0   ;;  %v1361_v29 = vmov 0.0   ;;  %vm1362_vm1 = vmmov 0  }
  0x91   : > { %448 = vmatpush1.bf16.msra.mxu0 %v1123_v1  ;;  %v333_v5 = vld [vmem:[%s287_s21] sm:$0xff]  ;;  %v1128_v8 = vld [vmem:[#allocation6 + $0x28] sm:$0xff]   ;;  %v1131_v11 = vld [vmem:[#allocation6 + $0x40] sm:$0xff]   ;;  %974 = vmatprep.subr.bf16.mxu1 %v1360_v19  ;;  %332 = vst [vmem:[#allocation2] sm:$0x1] %v1361_v29  ;;  %v498_v55 = vshrl.u32 %v497_v53, 7 }
  0x92   : > { %449 = vmatprep.subr.bf16.mxu0 %v1359_v0  ;;  %v851_v6 = vcombine.high %v333_v5, %v333_v5  ;;  %v1129_v9 = vld [vmem:[#allocation6 + $0x30] sm:$0xff]   ;;  %v1130_v10 = vld [vmem:[#allocation6 + $0x38] sm:$0xff]   ;;  %v1132_v12 = vld [vmem:[#allocation6 + $0x48] sm:$0xff]   ;;  %v850_v15 = vcombine.low %v333_v5, %v333_v5  ;;  %936 = vmatprep.mubr.msk.f32.mxu1 %vm1362_vm1, %v1361_v29  ;;  %vm607_vm3 = vcmask 1040384   ;;  %s866_s11 = sshll.u32 %s1341_s24, 4  ;;  %s326_s14 = scalar_lea.vmem [#allocation11], %s1606_s15 }
  0x93   : > { %v1133_v13 = vld [vmem:[#allocation6 + $0x50] sm:$0xff]   ;;  %v1134_v14 = vld [vmem:[#allocation6 + $0x58] sm:$0xff]   ;;  %v519_v16 = vld [vmem:[#allocation8] sm:$0xff]  ;;  %vm501_vm2 = vcmp.lt.s32.totalorder %v498_v55, 4  ;;  %s728_s13 = sshll.u32 %s326_s14, 4  ;;  %s1655_s8 = scalar_lea.hbm %s1710_s6, %s866_s11  ;;  %s1657_s13 = int_to_ptr.vmem [resolvable:$true] %s728_s13 }
  0x94   : > { %864 = vmatprep.mubr.msk.bf16.mxu0 %vm443_vm0, %v851_v6  ;;  %v520_v17 = vld [vmem:[#allocation8 + $0x8] sm:$0xff]  ;;  %v521_v20 = vld [vmem:[#allocation8 + $0x10] sm:$0xff]  ;;  %v522_v21 = vld [vmem:[#allocation8 + $0x18] sm:$0xff]  ;;  %s716_s27 = scalar_lea.sflag [#allocation5], %s1606_s15  ;;  %s1259_s28 = scalar_lea.vmem %s1657_s13, 16 }
  0x95   : > { %450 = vmatpush1.bf16.msra.mxu0 %v1124_v2  ;;  %v975_v18 = vpack.c.bf16 %v520_v17, %v519_v16  ;;  %v978_v22 = vpack.c.bf16 %v522_v21, %v521_v20  ;;  %v523_v23 = vld [vmem:[#allocation8 + $0x20] sm:$0xff]  ;;  %v524_v24 = vld [vmem:[#allocation8 + $0x28] sm:$0xff]  ;;  %v525_v26 = vld [vmem:[#allocation8 + $0x30] sm:$0xff]  ;;  %p1260_p7 = scmp.ne.s32.totalorder %s1657_s13, %s1259_s28  ;;  %s1363_s24 = smov [#allocation11]  }
  0x96   : > { %451 = vmatprep.subr.bf16.mxu0 %v1359_v0  ;;  %v981_v25 = vpack.c.bf16 %v524_v24, %v523_v23  ;;  %v526_v27 = vld [vmem:[#allocation8 + $0x38] sm:$0xff]  ;;  %v527_v30 = vld [vmem:[#allocation8 + $0x40] sm:$0xff]  ;;  %v528_v31 = vld [vmem:[#allocation8 + $0x48] sm:$0xff]  ;;  %s1263_s30 = sshll.u32 %s1363_s24, 4  ;;  %s1264_s30 = int_to_ptr.vmem [resolvable:$false] %s1263_s30 }
  0x97   : > { %976 = vmatpush3.bf16.msra.mxu1 %v975_v18  ;;  %v984_v28 = vpack.c.bf16 %v526_v27, %v525_v26  ;;  %v987_v32 = vpack.c.bf16 %v528_v31, %v527_v30  ;;  %v529_v33 = vld [vmem:[#allocation8 + $0x50] sm:$0xff]  ;;  %v530_v34 = vld [vmem:[#allocation8 + $0x58] sm:$0xff]  ;;  %v531_v36 = vld [vmem:[#allocation8 + $0x60] sm:$0xff]  ;;  %p1261_p6 = pnand %p1260_p7, %p1553_p3  ;;  %s1265_s20 = scalar_lea.vmem %s1264_s30, 32 }
  0x98   : > { %977 = vmatprep.subr.bf16.mxu1 %v1360_v19  ;;  %v990_v35 = vpack.c.bf16 %v530_v34, %v529_v33  ;;  %v532_v37 = vld [vmem:[#allocation8 + $0x68] sm:$0xff]  ;;  %v533_v39 = vld [vmem:[#allocation8 + $0x70] sm:$0xff]  ;;  %v534_v40 = vld [vmem:[#allocation8 + $0x78] sm:$0xff]  ;;  %p1266_p11 = scmp.lt.s32.totalorder %s1657_s13, %s1264_s30  ;;  %p1267_p5 = scmp.lt.s32.totalorder %s1265_s20, %s1259_s28 }
  0x99   : > { %452 = vmatpush1.bf16.msra.mxu0 %v1125_v3  ;;  %v993_v38 = vpack.c.bf16 %v532_v37, %v531_v36  ;;  %v996_v41 = vpack.c.bf16 %v534_v40, %v533_v39  ;;  %v849_v42 = vld [vmem:[%s1706_s2] ss:$0 sm:$0xff]  ;;  %v614_v6 = vld [vmem:[#allocation9] sm:$0xff]  ;;  %v621_v16 = vld [vmem:[#allocation9 + $0x38] sm:$0xff]  ;;  %p1262_p10 = pneg %p1261_p6 }
  0x9a   : > { %453 = vmatprep.subr.bf16.mxu0 %v1359_v0  ;;  %v505_v1 = vld [vmem:[#allocation2] sm:$0x1]  ;;  %v626_v31 = vld [vmem:[#allocation9 + $0x60] sm:$0xff]  ;;  %v628_v34 = vld [vmem:[#allocation9 + $0x70] sm:$0xff]  ;;  %p1268_p9 = por %p1267_p5, %p1266_p11 }
  0x9b   : > { %979 = vmatpush3.bf16.msra.mxu1 %v978_v22  ;;  %v535_v18 = vld [vmem:[%s1708_s4] sm:$0x1] }
  0x9c   : > { %980 = vmatprep.subr.bf16.mxu1 %v1360_v19  ;;  %v623_v26 = vld [vmem:[#allocation9 + $0x48] sm:$0xff]  ;;  %p1269_p0 = pnand %p1268_p9, %p1262_p10 }
  0x9d   : > { %454 = vmatpush1.bf16.msra.mxu0 %v1126_v4 }
  0x9e   : > { %455 = vmatprep.subr.bf16.mxu0 %v1359_v0 }
  0x9f   : > { %982 = vmatpush3.bf16.msra.mxu1 %v981_v25  ;;  %v622_v25 = vld [vmem:[#allocation9 + $0x40] sm:$0xff] }
  0xa0   : > { %983 = vmatprep.subr.bf16.mxu1 %v1360_v19  ;;  %v1011_v27 = vpack.c.bf16 %v623_v26, %v622_v25 }
  0xa1   : > { %456 = vmatpush1.bf16.msra.mxu0 %v1127_v7  ;;  %v615_v7 = vld [vmem:[#allocation9 + $0x8] sm:$0xff] }
  0xa2   : > { %457 = vmatprep.subr.bf16.mxu0 %v1359_v0 }
  0xa3   : > { %985 = vmatpush3.bf16.msra.mxu1 %v984_v28  ;;  %v624_v28 = vld [vmem:[#allocation9 + $0x50] sm:$0xff] }
  0xa4   : > { %986 = vmatprep.subr.bf16.mxu1 %v1360_v19 }
  0xa5   : > { %458 = vmatpush1.bf16.msra.mxu0 %v1128_v8  ;;  %v616_v8 = vld [vmem:[#allocation9 + $0x10] sm:$0xff] }
  0xa6   : > { %459 = vmatprep.subr.bf16.mxu0 %v1359_v0 }
  0xa7   : > { %988 = vmatpush3.bf16.msra.mxu1 %v987_v32  ;;  %v627_v32 = vld [vmem:[#allocation9 + $0x68] sm:$0xff] }
  0xa8   : > { %989 = vmatprep.subr.bf16.mxu1 %v1360_v19  ;;  %v1017_v33 = vpack.c.bf16 %v627_v32, %v626_v31 }
  0xa9   : > { %460 = vmatpush1.bf16.msra.mxu0 %v1129_v9  ;;  %v999_v9 = vpack.c.bf16 %v615_v7, %v614_v6 }
  0xaa   : > { %461 = vmatprep.subr.bf16.mxu0 %v1359_v0 }
  0xab   : > { %991 = vmatpush3.bf16.msra.mxu1 %v990_v35  ;;  %v629_v35 = vld [vmem:[#allocation9 + $0x78] sm:$0xff] }
  0xac   : > { %992 = vmatprep.subr.bf16.mxu1 %v1360_v19  ;;  %v1020_v36 = vpack.c.bf16 %v629_v35, %v628_v34 }
  0xad   : > { %462 = vmatpush1.bf16.msra.mxu0 %v1130_v10  ;;  %v617_v10 = vld [vmem:[#allocation9 + $0x18] sm:$0xff] }
  0xae   : > { %463 = vmatprep.subr.bf16.mxu0 %v1359_v0 }
  0xaf   : > { %994 = vmatpush3.bf16.msra.mxu1 %v993_v38 }
  0xb0   : > { %995 = vmatprep.subr.bf16.mxu1 %v1360_v19 }
  0xb1   : > { %464 = vmatpush1.bf16.msra.mxu0 %v1131_v11  ;;  %v1002_v11 = vpack.c.bf16 %v617_v10, %v616_v8 }
  0xb2   : > { %465 = vmatprep.subr.bf16.mxu0 %v1359_v0 }
  0xb3   : > { %997 = vmatpush3.bf16.msra.mxu1 %v996_v41 }
  0xb4   : > { %998 = vmatprep.subr.bf16.mxu1 %v1360_v19 }
  0xb5   : > { %466 = vmatpush1.bf16.msra.mxu0 %v1132_v12  ;;  %v618_v12 = vld [vmem:[#allocation9 + $0x20] sm:$0xff] }
  0xb6   : > { %467 = vmatprep.subr.bf16.mxu0 %v1359_v0 }
  0xb9   : > { %468 = vmatpush1.bf16.msra.mxu0 %v1133_v13  ;;  %v619_v13 = vld [vmem:[#allocation9 + $0x28] sm:$0xff] }
  0xba   : > { %469 = vmatprep.subr.bf16.mxu0 %v1359_v0 }
  0xbd   : > { %470 = vmatpush1.bf16.msra.mxu0 %v1134_v14  ;;  %v1005_v14 = vpack.c.bf16 %v619_v13, %v618_v12 }
  0xc0   : > { %480 = vmatmul.mubr.bf16.vlgmr.msra.gmra.mrb[0].mxu0 %v850_v15  ;;  %v620_v15 = vld [vmem:[#allocation9 + $0x30] sm:$0xff] }
  0xc1   : > { %v1008_v17 = vpack.c.bf16 %v621_v16, %v620_v15 }
 0x193   : > { %v481_v43 = vpop.f32.mrb[0].mxu0 }
 0x194   : > { %v482_v44 = vadd.f32 %v849_v42, %v481_v43  ;;  %v483_v45 = vpop.f32.mrb[1].mxu0 }
 0x195   : > { %v484_v46 = vpop.f32.mrb[2].mxu0 }
 0x196   : > { %v487_v47 = vmul.f32 %v482_v44, %v482_v44  ;;  %v485_v48 = vpop.f32.mrb[3].mxu0  ;;  %v707_v46 = vand.u32 127, %v497_v53 }
 0x198   : > { %v488_v49 = vmul.f32 %v487_v47, %v482_v44  ;;  %vm708_vm4 = vcmp.lt.s32.totalorder %v707_v46, 5 }
 0x19a   : > { %v489_v50 = vmul.f32 0.044715, %v488_v49 }
 0x19c   : > { %v490_v51 = vadd.f32 %v489_v50, %v482_v44 }
 0x19e   : > { %v491_v52 = vmul.f32 0.7978846, %v490_v51 }
 0x1a0   : > { %1137 = vtanh.f32 %v491_v52 }
 0x1aa   : > { %v1138_v54 = vpop.eup %1137 }
 0x1ab   : > { %v493_v56 = vadd.f32 1.0, %v1138_v54 }
 0x1ad   : > { %v494_v57 = vmul.f32 0.5, %v493_v56 }
 0x1af   : > { %v495_v58 = vmul.f32 %v494_v57, %v482_v44 }
 0x1b1   : > { %v504_v59 = vsel %vm501_vm2, %v495_v58, 0.0 }
 0x1b2   : > { %v506_v60 = vrot.slane %v504_v59, 4 }
 0x1b4   : > { %v507_v61 = vadd.f32 %v506_v60, %v504_v59 }
 0x1b6   : > { %v508_v62 = vrot.slane %v507_v61, 2 }
 0x1b8   : > { %v509_v63 = vadd.f32 %v508_v62, %v507_v61 }
 0x1ba   : > { %v510_v0 = vrot.slane %v509_v63, 1 }
 0x1bc   : > { %v511_v2 = vadd.f32 %v510_v0, %v509_v63 }
 0x1be   : > { %v512_v3 = vadd.f32 %v511_v2, %v505_v1 }
 0x1c0   : > { %513 = vst [vmem:[#allocation2] sm:$0x1] %v512_v3 }
 0x1c7   : > { %v517_v4 = vld [vmem:[#allocation2] sm:$0x1] }
 0x1c8   : > { %v518_v5 = vmul.f32 0.25, %v517_v4 }
 0x1ca   : > { %937 = vmatmul.mubr.f32.vlgmr.msra.gmra.mrb[0].mxu1 %v518_v5 }
 0x1cb   : > { %971 = vmatprep.mubr.msk.f32.mxu1 %vm1362_vm1, %v1361_v29  ;;  %1000 = vmatpush3.bf16.msra.mxu1 %v999_v9  ;;  %v625_v29 = vld [vmem:[#allocation9 + $0x58] sm:$0xff] }
 0x1cc   : > { %1001 = vmatprep.subr.bf16.mxu1 %v1360_v19  ;;  %v1014_v30 = vpack.c.bf16 %v625_v29, %v624_v28 }
 0x1cf   : > { %1003 = vmatpush3.bf16.msra.mxu1 %v1002_v11 }
 0x1d0   : > { %1004 = vmatprep.subr.bf16.mxu1 %v1360_v19 }
 0x1d3   : > { %1006 = vmatpush3.bf16.msra.mxu1 %v1005_v14 }
 0x1d4   : > { %1007 = vmatprep.subr.bf16.mxu1 %v1360_v19 }
 0x1d7   : > { %1009 = vmatpush3.bf16.msra.mxu1 %v1008_v17 }
 0x1d8   : > { %1010 = vmatprep.subr.bf16.mxu1 %v1360_v19 }
 0x1db   : > { %1012 = vmatpush3.bf16.msra.mxu1 %v1011_v27 }
 0x1dc   : > { %1013 = vmatprep.subr.bf16.mxu1 %v1360_v19 }
 0x1df   : > { %1015 = vmatpush3.bf16.msra.mxu1 %v1014_v30 }
 0x1e0   : > { %1016 = vmatprep.subr.bf16.mxu1 %v1360_v19 }
 0x1e3   : > { %1018 = vmatpush3.bf16.msra.mxu1 %v1017_v33 }
 0x1e4   : > { %1019 = vmatprep.subr.bf16.mxu1 %v1360_v19 }
 0x1e7   : > { %1021 = vmatpush3.bf16.msra.mxu1 %v1020_v36 }
 0x29d   : > { %v602_v20 = vpop.f32.mrb[0].mxu1 }
 0x29e   : > { %v603_v21 = vadd.f32 %v602_v20, %v535_v18  ;;  %v938_v22 = vpop.f32.mrb[1].mxu1 }
 0x2a0   : > { %v606_v23 = vmul.f32 %v603_v21, %v603_v21 }
 0x2a2   : > { %v608_v24 = vsel %vm607_vm3, %v606_v23, 0.0 }
 0x2a3   : > { %609 = vadd.xlane.f32.xlu0 %v608_v24 }
 0x330   : > { %v610_v37 = vpop.xlane.xlu0 %609 }
 0x331   : > { %v611_v38 = vadd.f32 1e-12, %v610_v37 }
 0x333   : > { %1139 = vrsqrt.f32 %v611_v38 }
 0x33d   : > { %v1140_v39 = vpop.eup %1139 }
 0x33e   : > { %v613_v40 = vmul.f32 %v1140_v39, %v603_v21 }
 0x340   : > { %972 = vmatmul.mubr.f32.vlgmr.msra.gmra.mrb[2].mxu1 %v613_v40 }
 0x413   : > { %v696_v41 = vpop.f32.mrb[2].mxu1 }
 0x414   : > { %v865_v42 = vmul.f32 -1.442695, %v696_v41  ;;  %v973_v43 = vpop.f32.mrb[3].mxu1 }
 0x416   : > { %1141 = vpow2.f32 %v865_v42 }
 0x420   : > { %v1142_v44 = vpop.eup %1141 }
 0x421   : > { %v703_v45 = vadd.f32 1.0, %v1142_v44 }
 0x423   : > { %1143 = vrcp.f32 %v703_v45 }
 0x42d   : > { %v1144_v19 = vpop.eup %1143 }
 0x42e   : > { %v709_v47 = vsel %vm708_vm4, %v1144_v19, 0.0 }
 0x42f   : > { %v710_v48 = vsel %vm607_vm3, %v709_v47, 0.0 }
 0x430   : > { %711 = vadd.xlane.f32.xlu0 %v710_v48 }
 0x4bd   : > { %v712_v49 = vpop.xlane.xlu0 %711 }
 0x4be   : > { %v713_v50 = vmul.f32 0.2, %v712_v49 }
 0x4c0   : > { %714 = vst [vmem:[%s326_s14] sm:$0x1] %v713_v50 }
 0x4c1   : > { %1272 = shalt.err (!%p1269_p0)
}
 0x4c2   : > { %s1273_s15 = scalar_lea.hbm %s1655_s8, 16  ;;  %s1277_s29 = scalar_lea.hbm %s1710_s6, 32 }
 0x4c3   : > { %p1274_p4 = scmp.ne.s32.totalorder %s1655_s8, %s1273_s15  ;;  %p1278_p1 = scmp.lt.u32.totalorder %s1655_s8, %s1710_s6 }
 0x4c4   : > { %p1279_p12 = scmp.lt.u32.totalorder %s1277_s29, %s1273_s15  ;;  %p1281_p7 = scmp.lt.u32.totalorder %s1273_s15, %s1655_s8 }
 0x4c5   : > { %p1275_p8 = pnand %p1274_p4, %p1553_p3 }
 0x4c6   : > { %p1280_p13 = por %p1279_p12, %p1278_p1 }
 0x4c7   : > { %p1276_p2 = pneg %p1275_p8 }
 0x4c8   : > { %p1282_p6 = por %p1281_p7, %p1280_p13 }
 0x4ca   : > { %p1283_p10 = pnand %p1282_p6, %p1276_p2 }
 0x4cc   : > { %1286 = shalt.err (!%p1283_p10)
}
 0x4cd   : > { %1036 = dma.vmem_to_hbm [thread:$0]  (%p1553_p3), %s1657_s13, 16, %s1655_s8, %s716_s27  }
 0x4ce PF: > { %s1735_s10 = sld [smem:[#allocation16_spill]]  ;;  %s1736_s11 = sld [smem:[#allocation17_spill]] }
 0x4cf   : > { %p1738_p5 = scmp.ge.s32.totalorder %s1349_s26, 2 }
 0x4d4   : > { %s740_s14 = sand.u32 1, %s1735_s10   ;;  %p1737_p11 = scmp.ne.s32.totalorder %s1736_s11, 0 }
 0x4d5   : > { %s741_s12 = scalar_lea.sflag [#allocation5], %s740_s14 }
 0x4d6   : > { %p1053_p9 = pnand %p1738_p5, %p1737_p11 }
 0x4d8   : > { %1324 = dma.done.wait (!%p1053_p9), %s741_s12, 16  }
 0x4d9   : > { %1326 = vsyncadd (!%p1053_p9), %s741_s12, 4294967280  ;;  %s24_s26 = sadd.s32 1, %s1349_s26   ;;  %s1739_s21 = smov %s1333_s22 }
 0x4da   : > { %p21_p0 = scmp.ge.s32.totalorder %s24_s26, 4   ;;  %s1740_s22 = smov %s1337_s23 }
 0x4db   : > { %s1741_s23 = smov %s1562_s17  ;;  %s1742_s24 = smov %s1345_s25 }
 0x4dc   : > { %s1743_s25 = smov %s1745_s1  ;;  %23 = sbr.rel (!%p21_p0) target bundleno = 10 (0xa), region = 109 }
 0x4e3   :  { %745 = vsyncpa [#allocation4], 1 }
 0x4e4   :  { %747 = vsyncpa [#allocation4 + $0x1], 1 }
 0x4e5   :  { %748 = vsyncpa [#allocation7], 1 }
 0x4e6   :  { %749 = vsyncpa [#allocation10], 1 }
 0x4e7   :  { %750 = vsyncpa [#allocation5], 1 }
 0x4e8   :  { %752 = vsyncpa [#allocation5 + $0x1], 1 }

</bundles_post_ra>
